<compile_context>
chip_gen: v5e
topology: v5e:2x2
jax: 0.10.0
libtpu: 0.0.40
codegen_flags: <defaults>
</compile_context>

<pallas_src>
import jax
import jax.numpy as jnp
from jax.experimental import pallas as pl
from jax.experimental.pallas import tpu as pltpu


def _supervised_loss_kernel(logits_ref, labels_ref, out_ref, acc_ref):
    """Per-tile body for one (batch element, spatial tile) grid point.

    logits_ref: (C, T)    logits tile (any float dtype, cast to f32 here)
    labels_ref: (1, T)    int32 labels tile (-1 marks spatial padding)
    out_ref:    (2C+1, 1) per-batch-element partial sums
                rows [0, C)  -> dice intersection per class
                rows [C, 2C) -> dice cardinality per class
                row  2C      -> cross-entropy sum
    acc_ref:    (2C+1, T) lane-shaped running accumulators (VMEM scratch)
    """
    num_classes = logits_ref.shape[0]
    t = pl.program_id(1)

    @pl.when(t == 0)
    def _init():
        acc_ref[...] = jnp.zeros_like(acc_ref)

    labels = labels_ref[...]                       # (1, T) int32
    valid = labels >= 0                            # False only on padding

    # ---- softmax over classes: unrolled running max / running sum (VPU) ----
    xs = [logits_ref[pl.ds(c, 1), :].astype(jnp.float32)
          for c in range(num_classes)]             # each (1, T)
    m = xs[0]
    for c in range(1, num_classes):
        m = jnp.maximum(m, xs[c])

    es = [jnp.exp(x_c - m) for x_c in xs]          # EUP exp (dominant unit)
    s = es[0]
    for c in range(1, num_classes):
        s = s + es[c]

    # One reciprocal per pixel (C x fewer EUP ops than per-class divides);
    # a single Newton step restores full f32 accuracy.
    inv_s = pl.reciprocal(s, approx=True)
    inv_s = inv_s * (2.0 - s * inv_s)

    # ---- per-class dice / CE partials (pure VPU, no one-hot materialized) ----
    x_tgt = jnp.zeros_like(m)
    for c in range(num_classes):
        cls_mask = labels == c                     # never true on padding (-1)
        p_c = es[c] * inv_s
        onehot_c = cls_mask.astype(jnp.float32)
        acc_ref[pl.ds(c, 1), :] += jnp.where(cls_mask, p_c, 0.0)
        acc_ref[pl.ds(num_classes + c, 1), :] += (
            jnp.where(valid, p_c, 0.0) + onehot_c)
        x_tgt = x_tgt + jnp.where(cls_mask, xs[c], 0.0)

    # -log softmax[target] = log(sum exp(x - m)) + m - x[target]
    neg_logp = jnp.log(s) + m - x_tgt
    acc_ref[pl.ds(2 * num_classes, 1), :] += jnp.where(valid, neg_logp, 0.0)

    # ---- epilogue: single cross-lane reduction, once per batch element ----
    @pl.when(t == pl.num_programs(1) - 1)
    def _finalize():
        out_ref[...] = jnp.sum(acc_ref[...], axis=1, keepdims=True)


def _round_up(x, m):
    return (x + m - 1) // m * m


def supervised_loss(outputs, masks, smooth=1e-5, max_spatial_tile=16384):
    """outputs: (N, C, H, W) float logits; masks: (N, H, W) integer labels."""
    n, num_classes, h, w = outputs.shape
    hw = h * w

    # Lane-aligned spatial tile (multiple of 128), capped so the per-step VMEM
    # footprint (2 inputs x 2 buffers + scratch) stays small on every chip gen.
    hw_tile = min(max_spatial_tile, _round_up(hw, 128))
    hw_pad = _round_up(hw, hw_tile)
    num_tiles = hw_pad // hw_tile

    # Keep the caller's logits dtype (bf16 halves the dominant HBM DMA);
    # the kernel upcasts each tile to f32 before exp/log.
    logits = outputs.reshape(n, num_classes, hw)
    labels = masks.reshape(n, 1, hw).astype(jnp.int32)
    if hw_pad != hw:
        pad = hw_pad - hw
        logits = jnp.pad(logits, ((0, 0), (0, 0), (0, pad)))
        labels = jnp.pad(labels, ((0, 0), (0, 0), (0, pad)), constant_values=-1)

    r = 2 * num_classes + 1
    bytes_accessed = (int(logits.size) * logits.dtype.itemsize
                      + int(labels.size) * 4 + n * r * 4)
    cost = pl.CostEstimate(
        flops=int(10 * n * num_classes * hw_pad),
        transcendentals=int(n * hw_pad * (num_classes + 2)),
        bytes_accessed=int(bytes_accessed),
    )

    partials = pl.pallas_call(
        _supervised_loss_kernel,
        out_shape=jax.ShapeDtypeStruct((n, r, 1), jnp.float32),
        grid_spec=pltpu.PrefetchScalarGridSpec(
            num_scalar_prefetch=0,
            grid=(n, num_tiles),                          # batch x spatial tiles
            in_specs=[
                pl.BlockSpec((None, num_classes, hw_tile), lambda b, t: (b, 0, t)),
                pl.BlockSpec((None, 1, hw_tile), lambda b, t: (b, 0, t)),
            ],
            out_specs=pl.BlockSpec((None, r, 1), lambda b, t: (b, 0, 0)),
            scratch_shapes=[pltpu.VMEM((r, hw_tile), jnp.float32)],
        ),
        compiler_params=pltpu.CompilerParams(
            dimension_semantics=("parallel", "arbitrary"),
            vmem_limit_bytes=32 * 1024 * 1024,
        ),
        cost_estimate=cost,
    )(logits, labels)

    # Tiny final combine on (N, 2C+1) partials — negligible work in plain JAX.
    partials = partials[:, :, 0]
    intersection = partials[:, :num_classes]                 # (N, C)
    cardinality = partials[:, num_classes:2 * num_classes]   # (N, C)
    ce_sum = jnp.sum(partials[:, 2 * num_classes])

    dice_score = (2.0 * intersection + smooth) / (cardinality + smooth)
    dice_loss = 1.0 - jnp.mean(dice_score)
    ce_loss = ce_sum / (n * hw)
    # TODO(synk): if an ignore label (e.g. 255 / -100) is ever used, mask those
    # pixels in-kernel and divide CE by the valid-pixel count instead of n*hw.
    return dice_loss + ce_loss


def _reference_loss(outputs, masks, smooth=1e-5):
    # Pure-JAX reference mirroring the PyTorch module (sanity check).
    n, c, h, w = outputs.shape
    p = jax.nn.softmax(outputs.astype(jnp.float32), axis=1)
    onehot = jax.nn.one_hot(masks, c, dtype=jnp.float32).transpose(0, 3, 1, 2)
    inter = jnp.sum(p * onehot, axis=(2, 3))
    card = jnp.sum(p + onehot, axis=(2, 3))
    dice = 1.0 - jnp.mean((2.0 * inter + smooth) / (card + smooth))
    logp = jax.nn.log_softmax(outputs.astype(jnp.float32), axis=1)
    ce = -jnp.mean(jnp.sum(logp * onehot, axis=1))
    return dice + ce


if __name__ == "__main__":
    key = jax.random.PRNGKey(0)
    k1, k2 = jax.random.split(key)

    N, C, H, W = 2, 4, 16, 16
    outputs = jax.random.normal(k1, (N, C, H, W), dtype=jnp.float32)
    masks = jax.random.randint(k2, (N, H, W), 0, C, dtype=jnp.int32)

    loss = supervised_loss(outputs, masks)
    loss = jax.block_until_ready(loss)

    ref = _reference_loss(outputs, masks)
    assert jnp.allclose(loss, ref, rtol=1e-4, atol=1e-4), (loss, ref)

    print("KERNEL_OK")
</pallas_src>

<mosaic_0001>
module attributes {stable_mosaic.version = 11 : i64} {
  func.func @_supervised_loss_kernel(%arg0: i32, %arg1: i32, %arg2: memref<1x4x256xf32, #tpu.memory_space<vmem>>, %arg3: memref<1x1x256xi32, #tpu.memory_space<vmem>>, %arg4: memref<1x9x1xf32, #tpu.memory_space<vmem>>, %arg5: memref<9x256xf32, #tpu.memory_space<vmem>>) attributes {dimension_semantics = [#tpu.dimension_semantics<parallel>, #tpu.dimension_semantics<arbitrary>], iteration_bounds = array<i64: 2, 1>, scalar_prefetch = 0 : i64, scratch_operands = 1 : i64, tpu.core_type = #tpu.core_type<tc>, window_params = [{transform_indices = @transform_0, window_bounds = array<i64: 1, 4, 256>}, {transform_indices = @transform_1, window_bounds = array<i64: 1, 1, 256>}, {transform_indices = @transform_2, window_bounds = array<i64: 1, 9, 1>}]} {
    %c0_i32 = arith.constant 0 : i32
    %0 = arith.cmpi eq, %arg1, %c0_i32 : i32
    %1 = arith.extui %0 : i1 to i32
    %c0_i32_0 = arith.constant 0 : i32
    %2 = arith.cmpi ne, %1, %c0_i32_0 : i32
    scf.if %2 {
      %cst_61 = arith.constant 0.000000e+00 : f32
      %122 = vector.broadcast %cst_61 : f32 to vector<9x256xf32>
      %c0_62 = arith.constant 0 : index
      %c0_63 = arith.constant 0 : index
      %123 = vector.load %arg5[%c0_62, %c0_63] : memref<9x256xf32, #tpu.memory_space<vmem>>, vector<9x256xf32>
      tpu.vector_store %arg5[%c0_62, %c0_63], %122 {strides = array<i32>} : memref<9x256xf32, #tpu.memory_space<vmem>>, vector<9x256xf32>,
    } else {
    }
    %c0 = arith.constant 0 : index
    %c0_1 = arith.constant 0 : index
    %c0_2 = arith.constant 0 : index
    %3 = vector.load %arg3[%c0, %c0_1, %c0_2] : memref<1x1x256xi32, #tpu.memory_space<vmem>>, vector<1x1x256xi32>
    %4 = vector.shape_cast %3 : vector<1x1x256xi32> to vector<1x256xi32>
    %c0_i32_3 = arith.constant 0 : i32
    %5 = vector.broadcast %c0_i32_3 : i32 to vector<1x256xi32>
    %6 = arith.cmpi sge, %4, %5 : vector<1x256xi32>
    %c0_4 = arith.constant 0 : index
    %c0_5 = arith.constant 0 : index
    %c0_6 = arith.constant 0 : index
    %7 = vector.load %arg2[%c0_4, %c0_5, %c0_6] : memref<1x4x256xf32, #tpu.memory_space<vmem>>, vector<1x1x256xf32>
    %8 = vector.shape_cast %7 : vector<1x1x256xf32> to vector<1x256xf32>
    %c0_7 = arith.constant 0 : index
    %c1 = arith.constant 1 : index
    %c0_8 = arith.constant 0 : index
    %9 = vector.load %arg2[%c0_7, %c1, %c0_8] : memref<1x4x256xf32, #tpu.memory_space<vmem>>, vector<1x1x256xf32>
    %10 = vector.shape_cast %9 : vector<1x1x256xf32> to vector<1x256xf32>
    %c0_9 = arith.constant 0 : index
    %c2 = arith.constant 2 : index
    %c0_10 = arith.constant 0 : index
    %11 = vector.load %arg2[%c0_9, %c2, %c0_10] : memref<1x4x256xf32, #tpu.memory_space<vmem>>, vector<1x1x256xf32>
    %12 = vector.shape_cast %11 : vector<1x1x256xf32> to vector<1x256xf32>
    %c0_11 = arith.constant 0 : index
    %c3 = arith.constant 3 : index
    %c0_12 = arith.constant 0 : index
    %13 = vector.load %arg2[%c0_11, %c3, %c0_12] : memref<1x4x256xf32, #tpu.memory_space<vmem>>, vector<1x1x256xf32>
    %14 = vector.shape_cast %13 : vector<1x1x256xf32> to vector<1x256xf32>
    %15 = arith.maximumf %8, %10 : vector<1x256xf32>
    %16 = arith.maximumf %15, %12 : vector<1x256xf32>
    %17 = arith.maximumf %16, %14 : vector<1x256xf32>
    %18 = arith.subf %8, %17 : vector<1x256xf32>
    %19 = math.exp %18 : vector<1x256xf32>
    %20 = arith.subf %10, %17 : vector<1x256xf32>
    %21 = math.exp %20 : vector<1x256xf32>
    %22 = arith.subf %12, %17 : vector<1x256xf32>
    %23 = math.exp %22 : vector<1x256xf32>
    %24 = arith.subf %14, %17 : vector<1x256xf32>
    %25 = math.exp %24 : vector<1x256xf32>
    %26 = arith.addf %19, %21 : vector<1x256xf32>
    %27 = arith.addf %26, %23 : vector<1x256xf32>
    %28 = arith.addf %27, %25 : vector<1x256xf32>
    %29 = tpu.reciprocal %28 {approx = true} : vector<1x256xf32> -> vector<1x256xf32>
    %30 = arith.mulf %28, %29 : vector<1x256xf32>
    %cst = arith.constant 2.000000e+00 : f32
    %31 = vector.broadcast %cst : f32 to vector<1x256xf32>
    %32 = arith.subf %31, %30 : vector<1x256xf32>
    %33 = arith.mulf %29, %32 : vector<1x256xf32>
    %cst_13 = arith.constant 0.000000e+00 : f32
    %34 = vector.broadcast %cst_13 : f32 to vector<1x256xf32>
    %c0_i32_14 = arith.constant 0 : i32
    %35 = vector.broadcast %c0_i32_14 : i32 to vector<1x256xi32>
    %36 = arith.cmpi eq, %4, %35 : vector<1x256xi32>
    %37 = arith.mulf %19, %33 : vector<1x256xf32>
    %38 = arith.extui %36 : vector<1x256xi1> to vector<1x256xi32>
    %39 = arith.sitofp %38 : vector<1x256xi32> to vector<1x256xf32>
    %c0_15 = arith.constant 0 : index
    %c0_16 = arith.constant 0 : index
    %40 = vector.load %arg5[%c0_15, %c0_16] : memref<9x256xf32, #tpu.memory_space<vmem>>, vector<1x256xf32>
    %cst_17 = arith.constant 0.000000e+00 : f32
    %41 = vector.broadcast %cst_17 : f32 to vector<1x256xf32>
    %42 = arith.select %36, %37, %41 : vector<1x256xi1>, vector<1x256xf32>
    %43 = arith.addf %40, %42 : vector<1x256xf32>
    %c0_18 = arith.constant 0 : index
    %c0_19 = arith.constant 0 : index
    %44 = vector.load %arg5[%c0_18, %c0_19] : memref<9x256xf32, #tpu.memory_space<vmem>>, vector<1x256xf32>
    tpu.vector_store %arg5[%c0_18, %c0_19], %43 {strides = array<i32>} : memref<9x256xf32, #tpu.memory_space<vmem>>, vector<1x256xf32>,
    %c4 = arith.constant 4 : index
    %c0_20 = arith.constant 0 : index
    %45 = vector.load %arg5[%c4, %c0_20] : memref<9x256xf32, #tpu.memory_space<vmem>>, vector<1x256xf32>
    %cst_21 = arith.constant 0.000000e+00 : f32
    %46 = vector.broadcast %cst_21 : f32 to vector<1x256xf32>
    %47 = arith.select %6, %37, %46 : vector<1x256xi1>, vector<1x256xf32>
    %48 = arith.addf %47, %39 : vector<1x256xf32>
    %49 = arith.addf %45, %48 : vector<1x256xf32>
    %c4_22 = arith.constant 4 : index
    %c0_23 = arith.constant 0 : index
    %50 = vector.load %arg5[%c4_22, %c0_23] : memref<9x256xf32, #tpu.memory_space<vmem>>, vector<1x256xf32>
    tpu.vector_store %arg5[%c4_22, %c0_23], %49 {strides = array<i32>} : memref<9x256xf32, #tpu.memory_space<vmem>>, vector<1x256xf32>,
    %cst_24 = arith.constant 0.000000e+00 : f32
    %51 = vector.broadcast %cst_24 : f32 to vector<1x256xf32>
    %52 = arith.select %36, %8, %51 : vector<1x256xi1>, vector<1x256xf32>
    %53 = arith.addf %34, %52 : vector<1x256xf32>
    %c1_i32 = arith.constant 1 : i32
    %54 = vector.broadcast %c1_i32 : i32 to vector<1x256xi32>
    %55 = arith.cmpi eq, %4, %54 : vector<1x256xi32>
    %56 = arith.mulf %21, %33 : vector<1x256xf32>
    %57 = arith.extui %55 : vector<1x256xi1> to vector<1x256xi32>
    %58 = arith.sitofp %57 : vector<1x256xi32> to vector<1x256xf32>
    %c1_25 = arith.constant 1 : index
    %c0_26 = arith.constant 0 : index
    %59 = vector.load %arg5[%c1_25, %c0_26] : memref<9x256xf32, #tpu.memory_space<vmem>>, vector<1x256xf32>
    %cst_27 = arith.constant 0.000000e+00 : f32
    %60 = vector.broadcast %cst_27 : f32 to vector<1x256xf32>
    %61 = arith.select %55, %56, %60 : vector<1x256xi1>, vector<1x256xf32>
    %62 = arith.addf %59, %61 : vector<1x256xf32>
    %c1_28 = arith.constant 1 : index
    %c0_29 = arith.constant 0 : index
    %63 = vector.load %arg5[%c1_28, %c0_29] : memref<9x256xf32, #tpu.memory_space<vmem>>, vector<1x256xf32>
    tpu.vector_store %arg5[%c1_28, %c0_29], %62 {strides = array<i32>} : memref<9x256xf32, #tpu.memory_space<vmem>>, vector<1x256xf32>,
    %c5 = arith.constant 5 : index
    %c0_30 = arith.constant 0 : index
    %64 = vector.load %arg5[%c5, %c0_30] : memref<9x256xf32, #tpu.memory_space<vmem>>, vector<1x256xf32>
    %cst_31 = arith.constant 0.000000e+00 : f32
    %65 = vector.broadcast %cst_31 : f32 to vector<1x256xf32>
    %66 = arith.select %6, %56, %65 : vector<1x256xi1>, vector<1x256xf32>
    %67 = arith.addf %66, %58 : vector<1x256xf32>
    %68 = arith.addf %64, %67 : vector<1x256xf32>
    %c5_32 = arith.constant 5 : index
    %c0_33 = arith.constant 0 : index
    %69 = vector.load %arg5[%c5_32, %c0_33] : memref<9x256xf32, #tpu.memory_space<vmem>>, vector<1x256xf32>
    tpu.vector_store %arg5[%c5_32, %c0_33], %68 {strides = array<i32>} : memref<9x256xf32, #tpu.memory_space<vmem>>, vector<1x256xf32>,
    %cst_34 = arith.constant 0.000000e+00 : f32
    %70 = vector.broadcast %cst_34 : f32 to vector<1x256xf32>
    %71 = arith.select %55, %10, %70 : vector<1x256xi1>, vector<1x256xf32>
    %72 = arith.addf %53, %71 : vector<1x256xf32>
    %c2_i32 = arith.constant 2 : i32
    %73 = vector.broadcast %c2_i32 : i32 to vector<1x256xi32>
    %74 = arith.cmpi eq, %4, %73 : vector<1x256xi32>
    %75 = arith.mulf %23, %33 : vector<1x256xf32>
    %76 = arith.extui %74 : vector<1x256xi1> to vector<1x256xi32>
    %77 = arith.sitofp %76 : vector<1x256xi32> to vector<1x256xf32>
    %c2_35 = arith.constant 2 : index
    %c0_36 = arith.constant 0 : index
    %78 = vector.load %arg5[%c2_35, %c0_36] : memref<9x256xf32, #tpu.memory_space<vmem>>, vector<1x256xf32>
    %cst_37 = arith.constant 0.000000e+00 : f32
    %79 = vector.broadcast %cst_37 : f32 to vector<1x256xf32>
    %80 = arith.select %74, %75, %79 : vector<1x256xi1>, vector<1x256xf32>
    %81 = arith.addf %78, %80 : vector<1x256xf32>
    %c2_38 = arith.constant 2 : index
    %c0_39 = arith.constant 0 : index
    %82 = vector.load %arg5[%c2_38, %c0_39] : memref<9x256xf32, #tpu.memory_space<vmem>>, vector<1x256xf32>
    tpu.vector_store %arg5[%c2_38, %c0_39], %81 {strides = array<i32>} : memref<9x256xf32, #tpu.memory_space<vmem>>, vector<1x256xf32>,
    %c6 = arith.constant 6 : index
    %c0_40 = arith.constant 0 : index
    %83 = vector.load %arg5[%c6, %c0_40] : memref<9x256xf32, #tpu.memory_space<vmem>>, vector<1x256xf32>
    %cst_41 = arith.constant 0.000000e+00 : f32
    %84 = vector.broadcast %cst_41 : f32 to vector<1x256xf32>
    %85 = arith.select %6, %75, %84 : vector<1x256xi1>, vector<1x256xf32>
    %86 = arith.addf %85, %77 : vector<1x256xf32>
    %87 = arith.addf %83, %86 : vector<1x256xf32>
    %c6_42 = arith.constant 6 : index
    %c0_43 = arith.constant 0 : index
    %88 = vector.load %arg5[%c6_42, %c0_43] : memref<9x256xf32, #tpu.memory_space<vmem>>, vector<1x256xf32>
    tpu.vector_store %arg5[%c6_42, %c0_43], %87 {strides = array<i32>} : memref<9x256xf32, #tpu.memory_space<vmem>>, vector<1x256xf32>,
    %cst_44 = arith.constant 0.000000e+00 : f32
    %89 = vector.broadcast %cst_44 : f32 to vector<1x256xf32>
    %90 = arith.select %74, %12, %89 : vector<1x256xi1>, vector<1x256xf32>
    %91 = arith.addf %72, %90 : vector<1x256xf32>
    %c3_i32 = arith.constant 3 : i32
    %92 = vector.broadcast %c3_i32 : i32 to vector<1x256xi32>
    %93 = arith.cmpi eq, %4, %92 : vector<1x256xi32>
    %94 = arith.mulf %25, %33 : vector<1x256xf32>
    %95 = arith.extui %93 : vector<1x256xi1> to vector<1x256xi32>
    %96 = arith.sitofp %95 : vector<1x256xi32> to vector<1x256xf32>
    %c3_45 = arith.constant 3 : index
    %c0_46 = arith.constant 0 : index
    %97 = vector.load %arg5[%c3_45, %c0_46] : memref<9x256xf32, #tpu.memory_space<vmem>>, vector<1x256xf32>
    %cst_47 = arith.constant 0.000000e+00 : f32
    %98 = vector.broadcast %cst_47 : f32 to vector<1x256xf32>
    %99 = arith.select %93, %94, %98 : vector<1x256xi1>, vector<1x256xf32>
    %100 = arith.addf %97, %99 : vector<1x256xf32>
    %c3_48 = arith.constant 3 : index
    %c0_49 = arith.constant 0 : index
    %101 = vector.load %arg5[%c3_48, %c0_49] : memref<9x256xf32, #tpu.memory_space<vmem>>, vector<1x256xf32>
    tpu.vector_store %arg5[%c3_48, %c0_49], %100 {strides = array<i32>} : memref<9x256xf32, #tpu.memory_space<vmem>>, vector<1x256xf32>,
    %c7 = arith.constant 7 : index
    %c0_50 = arith.constant 0 : index
    %102 = vector.load %arg5[%c7, %c0_50] : memref<9x256xf32, #tpu.memory_space<vmem>>, vector<1x256xf32>
    %cst_51 = arith.constant 0.000000e+00 : f32
    %103 = vector.broadcast %cst_51 : f32 to vector<1x256xf32>
    %104 = arith.select %6, %94, %103 : vector<1x256xi1>, vector<1x256xf32>
    %105 = arith.addf %104, %96 : vector<1x256xf32>
    %106 = arith.addf %102, %105 : vector<1x256xf32>
    %c7_52 = arith.constant 7 : index
    %c0_53 = arith.constant 0 : index
    %107 = vector.load %arg5[%c7_52, %c0_53] : memref<9x256xf32, #tpu.memory_space<vmem>>, vector<1x256xf32>
    tpu.vector_store %arg5[%c7_52, %c0_53], %106 {strides = array<i32>} : memref<9x256xf32, #tpu.memory_space<vmem>>, vector<1x256xf32>,
    %cst_54 = arith.constant 0.000000e+00 : f32
    %108 = vector.broadcast %cst_54 : f32 to vector<1x256xf32>
    %109 = arith.select %93, %14, %108 : vector<1x256xi1>, vector<1x256xf32>
    %110 = arith.addf %91, %109 : vector<1x256xf32>
    %111 = math.log %28 : vector<1x256xf32>
    %112 = arith.addf %111, %17 : vector<1x256xf32>
    %113 = arith.subf %112, %110 : vector<1x256xf32>
    %c8 = arith.constant 8 : index
    %c0_55 = arith.constant 0 : index
    %114 = vector.load %arg5[%c8, %c0_55] : memref<9x256xf32, #tpu.memory_space<vmem>>, vector<1x256xf32>
    %cst_56 = arith.constant 0.000000e+00 : f32
    %115 = vector.broadcast %cst_56 : f32 to vector<1x256xf32>
    %116 = arith.select %6, %113, %115 : vector<1x256xi1>, vector<1x256xf32>
    %117 = arith.addf %114, %116 : vector<1x256xf32>
    %c8_57 = arith.constant 8 : index
    %c0_58 = arith.constant 0 : index
    %118 = vector.load %arg5[%c8_57, %c0_58] : memref<9x256xf32, #tpu.memory_space<vmem>>, vector<1x256xf32>
    tpu.vector_store %arg5[%c8_57, %c0_58], %117 {strides = array<i32>} : memref<9x256xf32, #tpu.memory_space<vmem>>, vector<1x256xf32>,
    %c0_i32_59 = arith.constant 0 : i32
    %119 = arith.cmpi eq, %arg1, %c0_i32_59 : i32
    %120 = arith.extui %119 : i1 to i32
    %c0_i32_60 = arith.constant 0 : i32
    %121 = arith.cmpi ne, %120, %c0_i32_60 : i32
    scf.if %121 {
      %c0_61 = arith.constant 0 : index
      %c0_62 = arith.constant 0 : index
      %122 = vector.load %arg5[%c0_61, %c0_62] : memref<9x256xf32, #tpu.memory_space<vmem>>, vector<9x256xf32>
      %cst_63 = arith.constant dense<0.000000e+00> : vector<9xf32>
      %123 = vector.multi_reduction <add>, %122, %cst_63 [1] : vector<9x256xf32> to vector<9xf32>
      %124 = vector.shape_cast %123 : vector<9xf32> to vector<9x1xf32>
      %c0_64 = arith.constant 0 : index
      %c0_65 = arith.constant 0 : index
      %c0_66 = arith.constant 0 : index
      %125 = vector.load %arg4[%c0_64, %c0_65, %c0_66] : memref<1x9x1xf32, #tpu.memory_space<vmem>>, vector<1x9x1xf32>
      %126 = vector.shape_cast %125 : vector<1x9x1xf32> to vector<9x1xf32>
      %127 = vector.shape_cast %124 : vector<9x1xf32> to vector<1x9x1xf32>
      tpu.vector_store %arg4[%c0_64, %c0_65, %c0_66], %127 {strides = array<i32>} : memref<1x9x1xf32, #tpu.memory_space<vmem>>, vector<1x9x1xf32>,
    } else {
    }
    return
  }
  func.func @transform_0(%arg0: i32, %arg1: i32) -> (i32, i32, i32) {
    %c0_i32 = arith.constant 0 : i32
    %c0_i32_0 = arith.constant 0 : i32
    return %arg0, %c0_i32, %arg1 : i32, i32, i32
  }
  func.func @transform_1(%arg0: i32, %arg1: i32) -> (i32, i32, i32) {
    %c0_i32 = arith.constant 0 : i32
    %c0_i32_0 = arith.constant 0 : i32
    return %arg0, %c0_i32, %arg1 : i32, i32, i32
  }
  func.func @transform_2(%arg0: i32, %arg1: i32) -> (i32, i32, i32) {
    %c0_i32 = arith.constant 0 : i32
    %c0_i32_0 = arith.constant 0 : i32
    %c0_i32_1 = arith.constant 0 : i32
    return %arg0, %c0_i32, %c0_i32_0 : i32, i32, i32
  }
}

</mosaic_0001>

<bundles_post_ra>
// kernel: tpu_custom_call.1
= control target key start
LH: loop header
LB: loop body
LE: loop exit
PB: predicated region body
PF: predicated region fallthrough
CT: control target
= control target key end

     0   :  { %7 = vsyncpa [#allocation4], 0  ;;  %s881_s0 = inlined_call_operand.hbm [shape: f32[2,4,256], index: 0, kind: input, shape index: {}]   ;;  %s882_s1 = inlined_call_operand.hbm [shape: s32[2,1,256], index: 1, kind: input, shape index: {}]   ;;  %s883_s2 = inlined_call_operand.vmem [shape: f32[2,9,1], index: 2, kind: output, shape index: {}]  }
   0x1   :  { %9 = vsyncpa [#allocation4 + $0x1], 0 }
   0x2   :  { %10 = vsyncpa [#allocation6], 0 }
   0x3   :  { %12 = vsyncpa [#allocation6 + $0x1], 0  ;;  %s706_s9 = smov 0   ;;  %s708_s10 = smov 0  }
   0x4   :  { %s710_s11 = smov 0   ;;  %s712_s12 = smov 0  }
   0x5   :  { %s714_s13 = smov 0   ;;  %s716_s14 = smov 0  }
   0x6 LB: > { %s476_s15 = sadd.s32 4294967295, %s688_s14   ;;  %s30_s16 = sadd.s32 1, %s684_s13  ;;  %s688_s14 = sphi %s716_s14, %s18_s14   ;;  %s684_s13 = sphi %s714_s13, %s893_s13   ;;  %s680_s12 = sphi %s712_s12, %s892_s12   ;;  %s676_s11 = sphi %s710_s11, %s891_s11   ;;  %s672_s10 = sphi %s708_s10, %s890_s10   ;;  %s668_s9 = sphi %s706_s9, %s889_s9  }
   0x7   : > { %p32_p0 = scmp.ge.s32.totalorder %s30_s16, 2  ;;  %s39_s17 = sadd.s32 1, %s676_s11 }
   0x8   : > { %p46_p1 = scmp.ne.s32.totalorder %s676_s11, %s672_s10  ;;  %p47_p2 = scmp.eq.s32.totalorder %s688_s14, 0 }
   0x9   : > { %s895_s16 = smov (%p32_p0, %s30_s16), 0  ;;  %p52_p4 = scmp.ne.s32.totalorder %s672_s10, %s668_s9 }
   0xa   : > { %p742_p3 = por %p47_p2, %p46_p1  ;;  %s34_s19 = ssub.s32 %s684_s13, %s895_s16 }
   0xb   : > { %p53_p5 = scmp.eq.s32.totalorder %s476_s15, 0  ;;  %p37_p6 = scmp.eq.s32.totalorder %s34_s19, 0 }
   0xc   : > { %p512_p8 = scmp.lt.s32.totalorder %s688_s14, 2  ;;  %s130_s22 = sand.u32 1, %s676_s11  }
   0xd   : > { %p749_p7 = por %p53_p5, %p52_p4  ;;  %s499_s23 = sshll.u32 %s684_s13, 3 }
   0xe   : > { %s755_s21 = scalar_select %p37_p6, %s676_s11, %s39_s17  }
   0xf   : > { %s480_s24 = sshll.u32 %s130_s22, 3  ;;  %s141_s27 = scalar_lea.hbm %s881_s0, %s499_s23 }
  0x10   : > { %s143_s28 = sshll.u32 %s141_s27, 4  ;;  %s134_s29 = scalar_lea.vmem [#allocation3], %s480_s24  ;;  %s144_s28 = int_to_ptr.hbm [resolvable:$true] %s143_s28 }
  0x11   : > { %s145_s30 = sshll.u32 %s134_s29, 4  ;;  %p764_p9 = pnand %p512_p8, %p742_p3  ;;  %s146_s30 = int_to_ptr.vmem [resolvable:$true] %s145_s30 }
  0x12   : > { %p485_p10 = scmp.ge.s32.totalorder %s688_s14, 1  ;;  %p171_p11 = scmp.lt.s32.totalorder %s688_s14, 3 }
  0x13   : > { %s483_s4 = sshll.u32 %s130_s22, 1  ;;  %s131_s5 = scalar_lea.sflag [#allocation4], %s130_s22 }
  0x14   : > { %508 = dma.hbm_to_vmem [thread:$0]  (!%p764_p9), %s144_s28, 128, %s146_s30, %s131_s5  }
  0x15   : > { %p172_p12 = pnand %p485_p10, %p171_p11  ;;  %s484_s6 = sshll.u32 %s684_s13, 1 }
  0x16   : > { %s156_s7 = scalar_lea.vmem [#allocation5], %s483_s4  ;;  %s162_s17 = scalar_lea.hbm %s882_s1, %s484_s6 }
  0x17   : > { %s166_s8 = sshll.u32 %s156_s7, 4  ;;  %s164_s18 = sshll.u32 %s162_s17, 4  ;;  %s167_s8 = int_to_ptr.vmem [resolvable:$true] %s166_s8  ;;  %s165_s18 = int_to_ptr.hbm [resolvable:$true] %s164_s18 }
  0x18   : > { %s153_s19 = scalar_lea.sflag [#allocation6], %s130_s22  ;;  %175 = sbr.rel (%p172_p12) target bundleno = 219 (0xdb), region = 28 }
  0x19   : > { %511 = dma.hbm_to_vmem [thread:$0]  (!%p764_p9), %s165_s18, 32, %s167_s8, %s153_s19  }
  0x1a   : > { %s177_s23 = sand.u32 (!%p172_p12), 1, %s672_s10  }
  0x1b   : > { %s486_s24 = sshll.u32 (!%p172_p12), %s177_s23, 3  ;;  %s178_s25 = scalar_lea.sflag (!%p172_p12), [#allocation4], %s177_s23 }
  0x1c   : > { %s181_s26 = scalar_lea.vmem (!%p172_p12), [#allocation3], %s486_s24 }
  0x1d   : > { %659 = dma.done.wait (%p749_p7), %s178_s25, 128  }
  0x1e   : > { %661 = vsyncadd (%p749_p7), %s178_s25, 4294967168  ;;  %s487_s27 = sshll.u32 %s177_s23, 1  ;;  %s188_s28 = scalar_lea.sflag [#allocation6], %s177_s23 }
  0x1f   : > { %s191_s29 = scalar_lea.vmem [#allocation5], %s487_s27 }
  0x20   : > { %663 = dma.done.wait (%p749_p7), %s188_s28, 32  }
  0x21   : > { %665 = vsyncadd (%p749_p7), %s188_s28, 4294967264  ;;  %v690_v0 = vmov 0.0   ;;  %v235_v1 = vld [vmem:[%s181_s26] ss:$4 sm:$0x3]  ;;  %v271_v35 = vlaneseq  ;;  %vm363_vm6 = vcmask 1040384  }
  0x22   : > { %229 = vst [vmem:[#allocation2] sm:$0xff] %v690_v0  ;;  %v490_v2 = vld [vmem:[%s181_s26 + $0x1] ss:$4 sm:$0x3]  ;;  %v791_v18 = vld [vmem:[%s191_s29] sm:$0x3] }
  0x23   : > { %230 = vst [vmem:[#allocation2 + $0x8] sm:$0xff] %v690_v0  ;;  %v491_v3 = vld [vmem:[%s181_s26 + $0x2] ss:$4 sm:$0x3]  ;;  %v242_v4 = vmax.f32 %v235_v1, %v490_v2  ;;  %vm264_vm0 = vcmp.eq.s32.totalorder %v791_v18, 0  ;;  %vm286_vm1 = vcmp.eq.s32.totalorder %v791_v18, 1 }
  0x24   : > { %231 = vst [vmem:[#allocation2 + $0x10] sm:$0x1] %v690_v0  ;;  %v492_v5 = vld [vmem:[%s181_s26 + $0x3] ss:$4 sm:$0x3]  ;;  %v284_v24 = vsel %vm264_vm0, %v235_v1, 0.0 }
  0x25   : > { %232 = vst [vmem:[#allocation2 + $0x18] sm:$0x1] %v690_v0  ;;  %v243_v6 = vmax.f32 %v242_v4, %v491_v3  ;;  %v303_v25 = vsel %vm286_vm1, %v490_v2, 0.0  ;;  %vm305_vm2 = vcmp.eq.s32.totalorder %v791_v18, 2  ;;  %vm324_vm3 = vcmp.eq.s32.totalorder %v791_v18, 3  ;;  %p220_p13 = scmp.lt.s32.totalorder %s680_s12, 1 }
  0x26   : > { %v304_v26 = vadd.f32 %v303_v25, %v284_v24  ;;  %v322_v27 = vsel %vm305_vm2, %v491_v3, 0.0  ;;  %v341_v32 = vsel %vm324_vm3, %v492_v5, 0.0  ;;  %vm234_vm4 = vcmp.ge.s32.totalorder %v791_v18, 0 }
  0x27   : > { %v244_v7 = vmax.f32 %v243_v6, %v492_v5  ;;  %v493_v39 = vsel %vm264_vm0, 1.0, %v690_v0  ;;  %v494_v41 = vsel %vm286_vm1, 1.0, %v690_v0  ;;  %vm812_vm5 = vcmp.lt.s32.totalorder %v271_v35, 256  ;;  %s897_s12 = smov (!%p220_p13, %s680_s12), 1 }
  0x28   : > { %v323_v29 = vadd.f32 %v322_v27, %v304_v26  ;;  %v495_v50 = vsel %vm305_vm2, 1.0, %v690_v0  ;;  %v496_v52 = vsel %vm324_vm3, 1.0, %v690_v0  ;;  %s500_s20 = sshll.u32 %s897_s12, 4  ;;  %vm369_vm7 = vcmask 7168  }
  0x29   : > { %v245_v8 = vsub.f32 %v235_v1, %v244_v7  ;;  %v248_v9 = vsub.f32 %v490_v2, %v244_v7  ;;  %v251_v10 = vsub.f32 %v491_v3, %v244_v7  ;;  %v254_v11 = vsub.f32 %v492_v5, %v244_v7  ;;  %s224_s3 = scalar_lea.vmem %s883_s2, %s500_s20 }
  0x2a   : > { %v342_v36 = vadd.f32 %v341_v32, %v323_v29  ;;  %v268_v40 = vld [vmem:[#allocation2] ss:$8 sm:$0x3]  ;;  %v278_v43 = vld [vmem:[#allocation2 + $0x4] ss:$8 sm:$0x3] }
  0x2b   : > { %v246_v12 = vmul.f32 1.442695, %v245_v8  ;;  %v249_v13 = vmul.f32 1.442695, %v248_v9  ;;  %v252_v14 = vmul.f32 1.442695, %v251_v10 }
  0x2c   : > { %v255_v15 = vmul.f32 1.442695, %v254_v11  ;;  %v291_v45 = vld [vmem:[#allocation2 + $0x1] ss:$8 sm:$0x3]  ;;  %vm371_vm8 = vcmask 0  }
  0x2d   : > { %562 = vpow2.f32 %v246_v12  ;;  %v297_v46 = vld [vmem:[#allocation2 + $0x5] ss:$8 sm:$0x3]  ;;  %v310_v51 = vld [vmem:[#allocation2 + $0x2] ss:$8 sm:$0x3] }
  0x2e   : > { %564 = vpow2.f32 %v249_v13  ;;  %v316_v58 = vld [vmem:[#allocation2 + $0x6] ss:$8 sm:$0x3]  ;;  %v329_v63 = vld [vmem:[#allocation2 + $0x3] ss:$8 sm:$0x3] }
  0x2f   : > { %566 = vpow2.f32 %v252_v14  ;;  %v335_v0 = vld [vmem:[#allocation2 + $0x7] ss:$8 sm:$0x3]  ;;  %v348_v9 = vld [vmem:[#allocation2 + $0x10] ss:$8 sm:$0x3] }
  0x30   : > { %568 = vpow2.f32 %v255_v15 }
  0x33   : > { %v563_v16 = vpop.eup %562 }
  0x34   : > { %v565_v17 = vpop.eup %564 }
  0x35   : > { %v567_v19 = vpop.eup %566  ;;  %v257_v20 = vadd.f32 %v565_v17, %v563_v16 }
  0x36   : > { %v569_v21 = vpop.eup %568 }
  0x37   : > { %v258_v22 = vadd.f32 %v567_v19, %v257_v20 }
  0x39   : > { %v259_v23 = vadd.f32 %v569_v21, %v258_v22 }
  0x3b   : > { %570 = vrcp.f32 %v259_v23 }
  0x3c   : > { %572 = vlog2.f32 %v259_v23 }
  0x41   : > { %v571_v28 = vpop.eup %570 }
  0x42   : > { %v573_v30 = vpop.eup %572  ;;  %v261_v31 = vmul.f32 %v571_v28, %v259_v23 }
  0x43   : > { %v344_v33 = vmul.f32 0.6931472, %v573_v30 }
  0x44   : > { %v262_v34 = vsub.f32 2.0, %v261_v31 }
  0x45   : > { %v345_v37 = vadd.f32 %v344_v33, %v244_v7 }
  0x46   : > { %v263_v38 = vmul.f32 %v571_v28, %v262_v34 }
  0x47   : > { %v346_v53 = vsub.f32 %v345_v37, %v342_v36 }
  0x48   : > { %v265_v42 = vmul.f32 %v563_v16, %v263_v38  ;;  %v287_v44 = vmul.f32 %v565_v17, %v263_v38  ;;  %v306_v47 = vmul.f32 %v567_v19, %v263_v38  ;;  %v325_v48 = vmul.f32 %v569_v21, %v263_v38 }
  0x49   : > { %v349_v11 = vsel %vm234_vm4, %v346_v53, 0.0 }
  0x4a   : > { %v269_v54 = vsel %vm264_vm0, %v265_v42, 0.0  ;;  %v279_v55 = vsel %vm234_vm4, %v265_v42, 0.0  ;;  %v292_v56 = vsel %vm286_vm1, %v287_v44, 0.0  ;;  %v298_v57 = vsel %vm234_vm4, %v287_v44, 0.0 }
  0x4b   : > { %v270_v59 = vadd.f32 %v269_v54, %v268_v40  ;;  %v280_v60 = vadd.f32 %v493_v39, %v279_v55  ;;  %v293_v61 = vadd.f32 %v292_v56, %v291_v45  ;;  %v299_v62 = vadd.f32 %v494_v41, %v298_v57 }
  0x4c   : > { %v311_v1 = vsel %vm305_vm2, %v306_v47, 0.0  ;;  %v317_v2 = vsel %vm234_vm4, %v306_v47, 0.0  ;;  %v330_v3 = vsel %vm324_vm3, %v325_v48, 0.0  ;;  %v336_v4 = vsel %vm234_vm4, %v325_v48, 0.0 }
  0x4d   : > { %275 = vst.msk [vmem:[#allocation2] ss:$8 sm:$0x3] %vm812_vm5, %v270_v59  ;;  %v281_v5 = vadd.f32 %v280_v60, %v278_v43  ;;  %v300_v6 = vadd.f32 %v299_v62, %v297_v46  ;;  %v312_v7 = vadd.f32 %v311_v1, %v310_v51  ;;  %v318_v8 = vadd.f32 %v495_v50, %v317_v2 }
  0x4e   : > { %294 = vst.msk [vmem:[#allocation2 + $0x1] ss:$8 sm:$0x3] %vm812_vm5, %v293_v61  ;;  %v337_v10 = vadd.f32 %v496_v52, %v336_v4  ;;  %v331_v13 = vadd.f32 %v330_v3, %v329_v63  ;;  %v350_v15 = vadd.f32 %v349_v11, %v348_v9 }
  0x4f   : > { %282 = vst.msk [vmem:[#allocation2 + $0x4] ss:$8 sm:$0x3] %vm812_vm5, %v281_v5  ;;  %v319_v12 = vadd.f32 %v318_v8, %v316_v58 }
  0x50   : > { %301 = vst.msk [vmem:[#allocation2 + $0x5] ss:$8 sm:$0x3] %vm812_vm5, %v300_v6  ;;  %v338_v14 = vadd.f32 %v337_v10, %v335_v0 }
  0x51   : > { %313 = vst.msk [vmem:[#allocation2 + $0x2] ss:$8 sm:$0x3] %vm812_vm5, %v312_v7 }
  0x52   : > { %320 = vst.msk [vmem:[#allocation2 + $0x6] ss:$8 sm:$0x3] %vm812_vm5, %v319_v12 }
  0x53   : > { %332 = vst.msk [vmem:[#allocation2 + $0x3] ss:$8 sm:$0x3] %vm812_vm5, %v331_v13 }
  0x54   : > { %339 = vst.msk [vmem:[#allocation2 + $0x7] ss:$8 sm:$0x3] %vm812_vm5, %v338_v14 }
  0x55   : > { %351 = vst.msk [vmem:[#allocation2 + $0x10] ss:$8 sm:$0x3] %vm812_vm5, %v350_v15 }
  0x5b   : > { %v356_v16 = vld [vmem:[#allocation2] sm:$0xff]  ;;  %v357_v17 = vld [vmem:[#allocation2 + $0x8] sm:$0xff] }
  0x5c   : > { %v360_v18 = vadd.f32 %v357_v17, %v356_v16  ;;  %v358_v19 = vld [vmem:[#allocation2 + $0x10] sm:$0x1]  ;;  %v359_v20 = vld [vmem:[#allocation2 + $0x18] sm:$0x1] }
  0x5d   : > { %v364_v21 = vsel %vm363_vm6, %v358_v19, 0.0  ;;  %v365_v22 = vsel %vm363_vm6, %v359_v20, 0.0 }
  0x5e   : > { %361 = vadd.xlane.f32.xlu0 %v360_v18  ;;  %v366_v23 = vadd.f32 %v365_v22, %v364_v21 }
  0x66   : > { %367 = vadd.xlane.f32.xlu0 %v366_v23 }
  0xd1   : > { %v362_v24 = vpop.xlane.xlu0 %361 }
  0xd2   : > { %370 = vst.msk [vmem:[%s224_s3] sm:$0xff] %vm369_vm7, %v362_v24 }
  0xd9   : > { %v368_v25 = vpop.xlane.xlu0 %367 }
  0xda   : > { %372 = vst.msk [vmem:[%s224_s3 + $0x8] sm:$0x1] %vm371_vm8, %v368_v25 }
  0xdb PF: > { %s18_s14 = sadd.s32 1, %s688_s14   ;;  %s889_s9 = smov %s672_s10 }
  0xdc   : > { %p15_p0 = scmp.ge.s32.totalorder %s18_s14, 4   ;;  %s890_s10 = smov %s676_s11 }
  0xdd   : > { %s891_s11 = smov %s755_s21  ;;  %s892_s12 = smov %s684_s13 }
  0xde   : > { %s893_s13 = smov %s895_s16  ;;  %17 = sbr.rel (!%p15_p0) target bundleno = 6 (0x6), region = 100 }
  0xe3   :  { %394 = vsyncpa [#allocation4], 1 }
  0xe4   :  { %396 = vsyncpa [#allocation4 + $0x1], 1 }
  0xe5   :  { %397 = vsyncpa [#allocation6], 1 }
  0xe6   :  { %399 = vsyncpa [#allocation6 + $0x1], 1 }

</bundles_post_ra>
